<compile_context>
chip_gen: v7x
topology: tpu7x:2x2x1
jax: 0.10.0
libtpu: 0.0.40
codegen_flags: <defaults>
</compile_context>

<pallas_src>
import functools

import jax
import jax.numpy as jnp
from jax import lax
from jax.experimental import pallas as pl
from jax.experimental.pallas import tpu as pltpu


# ----------------------------- fused kernel --------------------------------

def _make_fused_kernel(has_proj, nwin, Ho):
    """Build the fused maxpool + BasicBlock-chain kernel (one batch element
    per grid step).  Activations live in a 2-D (Ho, Wo*C) layout."""

    def kernel(*refs):
        x_ref, o_ref = refs[0], refs[-1]
        prefs = refs[1:-1]

        # --- MaxPool2d(scale): the scale*scale window slabs were gathered
        #     along axis 1 by the wrapper; pooling = elementwise max. ---
        act = x_ref[0, 0]
        for k in range(1, nwin):
            act = jnp.maximum(act, x_ref[0, k])        # (Ho, Wo*Cin)

        # Constant (Ho, Ho) row-shift matrices (zero-padded shift up / down),
        # used to realize the dy = 0 / dy = 2 taps of the 3x3 conv.
        ri = lax.broadcasted_iota(jnp.int32, (Ho, Ho), 0)
        ci = lax.broadcasted_iota(jnp.int32, (Ho, Ho), 1)
        sdn = (ri == ci + 1).astype(jnp.float32)       # out row i <- row i-1
        sup = (ci == ri + 1).astype(jnp.float32)       # out row i <- row i+1

        def bn_relu(h, s_ref, b_ref):
            # folded BatchNorm (per-channel affine, tiled across W) + ReLU
            return jnp.maximum(h * s_ref[...] + b_ref[...], 0.0)

        def conv3x3(h, bw_ref):
            # 3x3, stride 1, pad 1 conv as three band matmuls (one per dy)
            # with block-Toeplitz weights; row shift applied afterwards.
            t0 = jnp.dot(h, bw_ref[0], preferred_element_type=jnp.float32)
            t1 = jnp.dot(h, bw_ref[1], preferred_element_type=jnp.float32)
            t2 = jnp.dot(h, bw_ref[2], preferred_element_type=jnp.float32)
            return (jnp.dot(sdn, t0, preferred_element_type=jnp.float32)
                    + t1
                    + jnp.dot(sup, t2, preferred_element_type=jnp.float32))

        # --- chain of BasicBlocks, residual kept in registers/VMEM ---
        idx = 0
        for proj in has_proj:
            s1, b1, bw1, s2, b2, bw2 = prefs[idx:idx + 6]
            idx += 6
            h = bn_relu(act, s1, b1)        # bn1 + relu
            y = conv3x3(h, bw1)             # conv1
            h = bn_relu(y, s2, b2)          # bn2 + relu
            y = conv3x3(h, bw2)             # conv2
            if proj:                        # BN + ReLU + 1x1-conv shortcut
                ssc, bsc, wsc = prefs[idx:idx + 3]
                idx += 3
                hs = bn_relu(act, ssc, bsc)
                act = y + jnp.dot(hs, wsc[...],
                                  preferred_element_type=jnp.float32)
            else:                           # identity shortcut
                act = y + act

        o_ref[0] = act                      # (Ho, Wo*Cout), lane-dense slab

    return kernel


# ----------------------------- spec helpers --------------------------------

def _full_spec(shape):
    """Whole array as a single VMEM-resident block (weights / affines)."""
    nd = len(shape)
    return pl.BlockSpec(tuple(shape), lambda n, _nd=nd: (0,) * _nd)


# ----------------------------- forward wrapper ------------------------------

def down_block_forward(x_nhwc, flat_params, *, scale, has_proj, out_ch):
    N, H, W, Cin = x_nhwc.shape
    Ho, Wo = H // scale, W // scale
    nwin = scale * scale

    # Gather the scale x scale pool windows into a leading axis so pooling is
    # a plain elementwise max inside the kernel (single XLA transpose, no 4x
    # strided-view materialization).  Layout of the last dim is w*Cin + c.
    xp = (x_nhwc.reshape(N, Ho, scale, Wo, scale, Cin)
                .transpose(0, 2, 4, 1, 3, 5)
                .reshape(N, nwin, Ho, Wo * Cin))

    kernel = _make_fused_kernel(has_proj, nwin, Ho)

    in_specs = [pl.BlockSpec((1, nwin, Ho, Wo * Cin), lambda n: (n, 0, 0, 0))]
    in_specs += [_full_spec(a.shape) for a in flat_params]

    # rough cost hint for XLA's scheduler (matmul flops only)
    mm_flops = 0
    for a in flat_params:
        if a.ndim == 3:                     # band conv weights (3, K, M)
            mm_flops += 2 * Ho * a.shape[0] * a.shape[1] * a.shape[2]
        elif a.ndim == 2 and a.shape[0] > 1:  # pointwise shortcut
            mm_flops += 2 * Ho * a.shape[0] * a.shape[1]
    bytes_accessed = (xp.size + sum(a.size for a in flat_params)
                      + N * Ho * Wo * out_ch) * 4
    cost = pl.CostEstimate(flops=N * mm_flops, transcendentals=0,
                           bytes_accessed=bytes_accessed)

    out = pl.pallas_call(
        kernel,
        out_shape=jax.ShapeDtypeStruct((N, Ho, Wo * out_ch), jnp.float32),
        grid=(N,),
        in_specs=in_specs,
        out_specs=pl.BlockSpec((1, Ho, Wo * out_ch), lambda n: (n, 0, 0)),
        compiler_params=pltpu.CompilerParams(
            dimension_semantics=("parallel",)),
        cost_estimate=cost,
    )(xp, *flat_params)

    return out.reshape(N, Ho, Wo, out_ch)


# ----------------------------- parameter prep -------------------------------

def _make_band_weight(w_hwio, Wo):
    """(3,3,Cin,Cout) conv weight -> (3, Wo*Cin, Wo*Cout) block-Toeplitz
    matrices, one per kernel row dy (stride 1, pad 1)."""
    kh, kw, cin, cout = w_hwio.shape
    big = jnp.zeros((kh, Wo * cin, Wo * cout), jnp.float32)
    for dy in range(kh):
        for dx in range(kw):
            for w in range(Wo):
                wi = w + dx - 1
                if 0 <= wi < Wo:
                    big = big.at[dy, wi * cin:(wi + 1) * cin,
                                 w * cout:(w + 1) * cout].set(w_hwio[dy, dx])
    return big


def _make_pointwise_weight(w_io, Wo):
    """(Cin,Cout) 1x1-conv weight -> (Wo*Cin, Wo*Cout) block-diagonal matrix."""
    cin, cout = w_io.shape
    big = jnp.zeros((Wo * cin, Wo * cout), jnp.float32)
    for w in range(Wo):
        big = big.at[w * cin:(w + 1) * cin, w * cout:(w + 1) * cout].set(w_io)
    return big


def prepare_down_block_params(raw_blocks, Wo):
    """Fold/tile per-channel BN affines across W and build band conv weights.
    Runs eagerly once, outside jit."""
    flat, has_proj = [], []
    for p in raw_blocks:
        cin, cout = p['w1'].shape[2], p['w1'].shape[3]
        flat += [jnp.tile(p['s1'], Wo).reshape(1, Wo * cin),
                 jnp.tile(p['b1'], Wo).reshape(1, Wo * cin),
                 _make_band_weight(p['w1'], Wo),
                 jnp.tile(p['s2'], Wo).reshape(1, Wo * cout),
                 jnp.tile(p['b2'], Wo).reshape(1, Wo * cout),
                 _make_band_weight(p['w2'], Wo)]
        if 'wsc' in p:
            flat += [jnp.tile(p['ssc'], Wo).reshape(1, Wo * cin),
                     jnp.tile(p['bsc'], Wo).reshape(1, Wo * cin),
                     _make_pointwise_weight(p['wsc'], Wo)]
            has_proj.append(True)
        else:
            has_proj.append(False)
    return tuple(flat), tuple(has_proj)


def _fold_bn(gamma, beta, mean, var, eps=1e-5):
    s = gamma / jnp.sqrt(var + eps)
    return s, beta - mean * s


def _init_bn(key, C):
    k1, k2, k3, k4 = jax.random.split(key, 4)
    gamma = jax.random.uniform(k1, (C,), minval=0.5, maxval=1.5)
    beta = 0.1 * jax.random.normal(k2, (C,))
    mean = 0.1 * jax.random.normal(k3, (C,))
    var = jax.random.uniform(k4, (C,), minval=0.5, maxval=1.5)
    return _fold_bn(gamma, beta, mean, var)


def init_basic_block(key, cin, cout):
    ks = jax.random.split(key, 6)
    p = {}
    p['s1'], p['b1'] = _init_bn(ks[0], cin)
    p['w1'] = 0.1 * jax.random.normal(ks[1], (3, 3, cin, cout))   # conv3x3 HWIO
    p['s2'], p['b2'] = _init_bn(ks[2], cout)
    p['w2'] = 0.1 * jax.random.normal(ks[3], (3, 3, cout, cout))  # conv3x3 HWIO
    if cin != cout:   # stride==1 here, so projection iff channel mismatch
        p['ssc'], p['bsc'] = _init_bn(ks[4], cin)
        p['wsc'] = 0.1 * jax.random.normal(ks[5], (cin, cout))    # 1x1 conv
    return p


# ----------------------------- pure-JAX reference ---------------------------

def _ref_basic_block(x, p):
    def conv3x3(h, w):
        return lax.conv_general_dilated(h, w, (1, 1), ((1, 1), (1, 1)),
                                        dimension_numbers=('NHWC', 'HWIO', 'NHWC'),
                                        precision=lax.Precision.HIGHEST)
    h = jnp.maximum(x * p['s1'] + p['b1'], 0.0)
    y = conv3x3(h, p['w1'])
    y = jnp.maximum(y * p['s2'] + p['b2'], 0.0)
    y = conv3x3(y, p['w2'])
    if 'wsc' in p:
        hs = jnp.maximum(x * p['ssc'] + p['bsc'], 0.0)
        sc = jnp.einsum('nhwc,co->nhwo', hs, p['wsc'],
                        precision=lax.Precision.HIGHEST)
    else:
        sc = x
    return y + sc


def _ref_down_block(x, params, scale):
    N, H, W, C = x.shape
    h = x.reshape(N, H // scale, scale, W // scale, scale, C).max(axis=(2, 4))
    for p in params:
        h = _ref_basic_block(h, p)
    return h


# ----------------------------- main ------------------------------------------

if __name__ == "__main__":
    key = jax.random.PRNGKey(0)
    kx, kp1, kp2 = jax.random.split(key, 3)

    N, in_ch, H, W = 2, 4, 16, 16
    out_ch, scale, num_block = 8, 2, 2

    # PyTorch-convention NCHW input, transposed to the kernel layout (NHWC).
    x_nchw = jax.random.normal(kx, (N, in_ch, H, W), dtype=jnp.float32)
    x = jnp.transpose(x_nchw, (0, 2, 3, 1))

    raw_params = [init_basic_block(kp1, in_ch, out_ch),
                  init_basic_block(kp2, out_ch, out_ch)]

    Wo = W // scale
    flat_params, has_proj = prepare_down_block_params(raw_params, Wo)

    fwd = jax.jit(functools.partial(down_block_forward, scale=scale,
                                    has_proj=has_proj, out_ch=out_ch))
    out_nhwc = jax.block_until_ready(fwd(x, flat_params))

    assert out_nhwc.shape == (N, H // scale, W // scale, out_ch)

    ref = _ref_down_block(x, raw_params, scale)
    err = float(jnp.max(jnp.abs(out_nhwc - ref)))
    if not jnp.allclose(out_nhwc, ref, atol=2e-3, rtol=2e-3):
        raise SystemExit(f"mismatch vs reference, max abs diff = {err:e}")

    out_nchw = jnp.transpose(out_nhwc, (0, 3, 1, 2))  # back to PyTorch NCHW
    jax.block_until_ready(out_nchw)
    print("KERNEL_OK")
</pallas_src>

<mosaic_0001>
module attributes {stable_mosaic.version = 11 : i64} {
  func.func @kernel(%arg0: i32, %arg1: memref<1x4x8x32xf32, #tpu.memory_space<vmem>>, %arg2: memref<1x32xf32, #tpu.memory_space<vmem>>, %arg3: memref<1x32xf32, #tpu.memory_space<vmem>>, %arg4: memref<3x32x64xf32, #tpu.memory_space<vmem>>, %arg5: memref<1x64xf32, #tpu.memory_space<vmem>>, %arg6: memref<1x64xf32, #tpu.memory_space<vmem>>, %arg7: memref<3x64x64xf32, #tpu.memory_space<vmem>>, %arg8: memref<1x32xf32, #tpu.memory_space<vmem>>, %arg9: memref<1x32xf32, #tpu.memory_space<vmem>>, %arg10: memref<32x64xf32, #tpu.memory_space<vmem>>, %arg11: memref<1x64xf32, #tpu.memory_space<vmem>>, %arg12: memref<1x64xf32, #tpu.memory_space<vmem>>, %arg13: memref<3x64x64xf32, #tpu.memory_space<vmem>>, %arg14: memref<1x64xf32, #tpu.memory_space<vmem>>, %arg15: memref<1x64xf32, #tpu.memory_space<vmem>>, %arg16: memref<3x64x64xf32, #tpu.memory_space<vmem>>, %arg17: memref<1x8x64xf32, #tpu.memory_space<vmem>>) attributes {dimension_semantics = [#tpu.dimension_semantics<parallel>], iteration_bounds = array<i64: 2>, scalar_prefetch = 0 : i64, scratch_operands = 0 : i64, tpu.core_type = #tpu.core_type<tc>, window_params = [{transform_indices = @transform_0, window_bounds = array<i64: 1, 4, 8, 32>}, {pipeline_mode = #tpu.pipeline_mode<synchronous>, transform_indices = @transform_1, window_bounds = array<i64: 1, 32>}, {pipeline_mode = #tpu.pipeline_mode<synchronous>, transform_indices = @transform_2, window_bounds = array<i64: 1, 32>}, {pipeline_mode = #tpu.pipeline_mode<synchronous>, transform_indices = @transform_3, window_bounds = array<i64: 3, 32, 64>}, {pipeline_mode = #tpu.pipeline_mode<synchronous>, transform_indices = @transform_4, window_bounds = array<i64: 1, 64>}, {pipeline_mode = #tpu.pipeline_mode<synchronous>, transform_indices = @transform_5, window_bounds = array<i64: 1, 64>}, {pipeline_mode = #tpu.pipeline_mode<synchronous>, transform_indices = @transform_6, window_bounds = array<i64: 3, 64, 64>}, {pipeline_mode = #tpu.pipeline_mode<synchronous>, transform_indices = @transform_7, window_bounds = array<i64: 1, 32>}, {pipeline_mode = #tpu.pipeline_mode<synchronous>, transform_indices = @transform_8, window_bounds = array<i64: 1, 32>}, {pipeline_mode = #tpu.pipeline_mode<synchronous>, transform_indices = @transform_9, window_bounds = array<i64: 32, 64>}, {pipeline_mode = #tpu.pipeline_mode<synchronous>, transform_indices = @transform_10, window_bounds = array<i64: 1, 64>}, {pipeline_mode = #tpu.pipeline_mode<synchronous>, transform_indices = @transform_11, window_bounds = array<i64: 1, 64>}, {pipeline_mode = #tpu.pipeline_mode<synchronous>, transform_indices = @transform_12, window_bounds = array<i64: 3, 64, 64>}, {pipeline_mode = #tpu.pipeline_mode<synchronous>, transform_indices = @transform_13, window_bounds = array<i64: 1, 64>}, {pipeline_mode = #tpu.pipeline_mode<synchronous>, transform_indices = @transform_14, window_bounds = array<i64: 1, 64>}, {pipeline_mode = #tpu.pipeline_mode<synchronous>, transform_indices = @transform_15, window_bounds = array<i64: 3, 64, 64>}, {transform_indices = @transform_16, window_bounds = array<i64: 1, 8, 64>}]} {
    %c0 = arith.constant 0 : index
    %c0_0 = arith.constant 0 : index
    %c0_1 = arith.constant 0 : index
    %c0_2 = arith.constant 0 : index
    %0 = vector.load %arg1[%c0, %c0_0, %c0_1, %c0_2] : memref<1x4x8x32xf32, #tpu.memory_space<vmem>>, vector<1x1x8x32xf32>
    %1 = vector.shape_cast %0 : vector<1x1x8x32xf32> to vector<8x32xf32>
    %c0_3 = arith.constant 0 : index
    %c1 = arith.constant 1 : index
    %c0_4 = arith.constant 0 : index
    %c0_5 = arith.constant 0 : index
    %2 = vector.load %arg1[%c0_3, %c1, %c0_4, %c0_5] : memref<1x4x8x32xf32, #tpu.memory_space<vmem>>, vector<1x1x8x32xf32>
    %3 = vector.shape_cast %2 : vector<1x1x8x32xf32> to vector<8x32xf32>
    %4 = arith.maximumf %1, %3 : vector<8x32xf32>
    %c0_6 = arith.constant 0 : index
    %c2 = arith.constant 2 : index
    %c0_7 = arith.constant 0 : index
    %c0_8 = arith.constant 0 : index
    %5 = vector.load %arg1[%c0_6, %c2, %c0_7, %c0_8] : memref<1x4x8x32xf32, #tpu.memory_space<vmem>>, vector<1x1x8x32xf32>
    %6 = vector.shape_cast %5 : vector<1x1x8x32xf32> to vector<8x32xf32>
    %7 = arith.maximumf %4, %6 : vector<8x32xf32>
    %c0_9 = arith.constant 0 : index
    %c3 = arith.constant 3 : index
    %c0_10 = arith.constant 0 : index
    %c0_11 = arith.constant 0 : index
    %8 = vector.load %arg1[%c0_9, %c3, %c0_10, %c0_11] : memref<1x4x8x32xf32, #tpu.memory_space<vmem>>, vector<1x1x8x32xf32>
    %9 = vector.shape_cast %8 : vector<1x1x8x32xf32> to vector<8x32xf32>
    %10 = arith.maximumf %7, %9 : vector<8x32xf32>
    %11 = tpu.iota {dimensions = array<i32: 0>} : vector<8x8xi32>
    %12 = tpu.iota {dimensions = array<i32: 1>} : vector<8x8xi32>
    %c1_i32 = arith.constant 1 : i32
    %13 = vector.broadcast %c1_i32 : i32 to vector<8x8xi32>
    %14 = arith.addi %12, %13 : vector<8x8xi32>
    %15 = arith.cmpi eq, %11, %14 : vector<8x8xi32>
    %16 = arith.extui %15 : vector<8x8xi1> to vector<8x8xi32>
    %17 = arith.sitofp %16 : vector<8x8xi32> to vector<8x8xf32>
    %c1_i32_12 = arith.constant 1 : i32
    %18 = vector.broadcast %c1_i32_12 : i32 to vector<8x8xi32>
    %19 = arith.addi %11, %18 : vector<8x8xi32>
    %20 = arith.cmpi eq, %12, %19 : vector<8x8xi32>
    %21 = arith.extui %20 : vector<8x8xi1> to vector<8x8xi32>
    %22 = arith.sitofp %21 : vector<8x8xi32> to vector<8x8xf32>
    %c0_13 = arith.constant 0 : index
    %c0_14 = arith.constant 0 : index
    %23 = vector.load %arg2[%c0_13, %c0_14] : memref<1x32xf32, #tpu.memory_space<vmem>>, vector<1x32xf32>
    %24 = vector.broadcast %23 : vector<1x32xf32> to vector<8x32xf32>
    %25 = arith.mulf %10, %24 : vector<8x32xf32>
    %c0_15 = arith.constant 0 : index
    %c0_16 = arith.constant 0 : index
    %26 = vector.load %arg3[%c0_15, %c0_16] : memref<1x32xf32, #tpu.memory_space<vmem>>, vector<1x32xf32>
    %27 = vector.broadcast %26 : vector<1x32xf32> to vector<8x32xf32>
    %28 = arith.addf %25, %27 : vector<8x32xf32>
    %cst = arith.constant 0.000000e+00 : f32
    %29 = vector.broadcast %cst : f32 to vector<8x32xf32>
    %30 = arith.maximumf %28, %29 : vector<8x32xf32>
    %c0_17 = arith.constant 0 : index
    %c0_18 = arith.constant 0 : index
    %c0_19 = arith.constant 0 : index
    %31 = vector.load %arg4[%c0_17, %c0_18, %c0_19] : memref<3x32x64xf32, #tpu.memory_space<vmem>>, vector<1x32x64xf32>
    %32 = vector.shape_cast %31 : vector<1x32x64xf32> to vector<32x64xf32>
    %cst_20 = arith.constant dense<0.000000e+00> : vector<8x64xf32>
    %33 = tpu.matmul %30, %32, %cst_20 {dimension_numbers = #tpu.dot_dimension_numbers<[1], [0], [0], [1], [0, 0, 1, 1], [], []>} : vector<8x32xf32>, vector<32x64xf32>, vector<8x64xf32> -> vector<8x64xf32>
    %c1_21 = arith.constant 1 : index
    %c0_22 = arith.constant 0 : index
    %c0_23 = arith.constant 0 : index
    %34 = vector.load %arg4[%c1_21, %c0_22, %c0_23] : memref<3x32x64xf32, #tpu.memory_space<vmem>>, vector<1x32x64xf32>
    %35 = vector.shape_cast %34 : vector<1x32x64xf32> to vector<32x64xf32>
    %cst_24 = arith.constant dense<0.000000e+00> : vector<8x64xf32>
    %36 = tpu.matmul %30, %35, %cst_24 {dimension_numbers = #tpu.dot_dimension_numbers<[1], [0], [0], [1], [0, 0, 1, 1], [], []>} : vector<8x32xf32>, vector<32x64xf32>, vector<8x64xf32> -> vector<8x64xf32>
    %c2_25 = arith.constant 2 : index
    %c0_26 = arith.constant 0 : index
    %c0_27 = arith.constant 0 : index
    %37 = vector.load %arg4[%c2_25, %c0_26, %c0_27] : memref<3x32x64xf32, #tpu.memory_space<vmem>>, vector<1x32x64xf32>
    %38 = vector.shape_cast %37 : vector<1x32x64xf32> to vector<32x64xf32>
    %cst_28 = arith.constant dense<0.000000e+00> : vector<8x64xf32>
    %39 = tpu.matmul %30, %38, %cst_28 {dimension_numbers = #tpu.dot_dimension_numbers<[1], [0], [0], [1], [0, 0, 1, 1], [], []>} : vector<8x32xf32>, vector<32x64xf32>, vector<8x64xf32> -> vector<8x64xf32>
    %cst_29 = arith.constant dense<0.000000e+00> : vector<8x64xf32>
    %40 = tpu.matmul %17, %33, %cst_29 {dimension_numbers = #tpu.dot_dimension_numbers<[1], [0], [0], [1], [0, 0, 1, 1], [], []>} : vector<8x8xf32>, vector<8x64xf32>, vector<8x64xf32> -> vector<8x64xf32>
    %41 = arith.addf %40, %36 : vector<8x64xf32>
    %cst_30 = arith.constant dense<0.000000e+00> : vector<8x64xf32>
    %42 = tpu.matmul %22, %39, %cst_30 {dimension_numbers = #tpu.dot_dimension_numbers<[1], [0], [0], [1], [0, 0, 1, 1], [], []>} : vector<8x8xf32>, vector<8x64xf32>, vector<8x64xf32> -> vector<8x64xf32>
    %43 = arith.addf %41, %42 : vector<8x64xf32>
    %c0_31 = arith.constant 0 : index
    %c0_32 = arith.constant 0 : index
    %44 = vector.load %arg5[%c0_31, %c0_32] : memref<1x64xf32, #tpu.memory_space<vmem>>, vector<1x64xf32>
    %45 = vector.broadcast %44 : vector<1x64xf32> to vector<8x64xf32>
    %46 = arith.mulf %43, %45 : vector<8x64xf32>
    %c0_33 = arith.constant 0 : index
    %c0_34 = arith.constant 0 : index
    %47 = vector.load %arg6[%c0_33, %c0_34] : memref<1x64xf32, #tpu.memory_space<vmem>>, vector<1x64xf32>
    %48 = vector.broadcast %47 : vector<1x64xf32> to vector<8x64xf32>
    %49 = arith.addf %46, %48 : vector<8x64xf32>
    %cst_35 = arith.constant 0.000000e+00 : f32
    %50 = vector.broadcast %cst_35 : f32 to vector<8x64xf32>
    %51 = arith.maximumf %49, %50 : vector<8x64xf32>
    %c0_36 = arith.constant 0 : index
    %c0_37 = arith.constant 0 : index
    %c0_38 = arith.constant 0 : index
    %52 = vector.load %arg7[%c0_36, %c0_37, %c0_38] : memref<3x64x64xf32, #tpu.memory_space<vmem>>, vector<1x64x64xf32>
    %53 = vector.shape_cast %52 : vector<1x64x64xf32> to vector<64x64xf32>
    %cst_39 = arith.constant dense<0.000000e+00> : vector<8x64xf32>
    %54 = tpu.matmul %51, %53, %cst_39 {dimension_numbers = #tpu.dot_dimension_numbers<[1], [0], [0], [1], [0, 0, 1, 1], [], []>} : vector<8x64xf32>, vector<64x64xf32>, vector<8x64xf32> -> vector<8x64xf32>
    %c1_40 = arith.constant 1 : index
    %c0_41 = arith.constant 0 : index
    %c0_42 = arith.constant 0 : index
    %55 = vector.load %arg7[%c1_40, %c0_41, %c0_42] : memref<3x64x64xf32, #tpu.memory_space<vmem>>, vector<1x64x64xf32>
    %56 = vector.shape_cast %55 : vector<1x64x64xf32> to vector<64x64xf32>
    %cst_43 = arith.constant dense<0.000000e+00> : vector<8x64xf32>
    %57 = tpu.matmul %51, %56, %cst_43 {dimension_numbers = #tpu.dot_dimension_numbers<[1], [0], [0], [1], [0, 0, 1, 1], [], []>} : vector<8x64xf32>, vector<64x64xf32>, vector<8x64xf32> -> vector<8x64xf32>
    %c2_44 = arith.constant 2 : index
    %c0_45 = arith.constant 0 : index
    %c0_46 = arith.constant 0 : index
    %58 = vector.load %arg7[%c2_44, %c0_45, %c0_46] : memref<3x64x64xf32, #tpu.memory_space<vmem>>, vector<1x64x64xf32>
    %59 = vector.shape_cast %58 : vector<1x64x64xf32> to vector<64x64xf32>
    %cst_47 = arith.constant dense<0.000000e+00> : vector<8x64xf32>
    %60 = tpu.matmul %51, %59, %cst_47 {dimension_numbers = #tpu.dot_dimension_numbers<[1], [0], [0], [1], [0, 0, 1, 1], [], []>} : vector<8x64xf32>, vector<64x64xf32>, vector<8x64xf32> -> vector<8x64xf32>
    %cst_48 = arith.constant dense<0.000000e+00> : vector<8x64xf32>
    %61 = tpu.matmul %17, %54, %cst_48 {dimension_numbers = #tpu.dot_dimension_numbers<[1], [0], [0], [1], [0, 0, 1, 1], [], []>} : vector<8x8xf32>, vector<8x64xf32>, vector<8x64xf32> -> vector<8x64xf32>
    %62 = arith.addf %61, %57 : vector<8x64xf32>
    %cst_49 = arith.constant dense<0.000000e+00> : vector<8x64xf32>
    %63 = tpu.matmul %22, %60, %cst_49 {dimension_numbers = #tpu.dot_dimension_numbers<[1], [0], [0], [1], [0, 0, 1, 1], [], []>} : vector<8x8xf32>, vector<8x64xf32>, vector<8x64xf32> -> vector<8x64xf32>
    %64 = arith.addf %62, %63 : vector<8x64xf32>
    %c0_50 = arith.constant 0 : index
    %c0_51 = arith.constant 0 : index
    %65 = vector.load %arg8[%c0_50, %c0_51] : memref<1x32xf32, #tpu.memory_space<vmem>>, vector<1x32xf32>
    %66 = vector.broadcast %65 : vector<1x32xf32> to vector<8x32xf32>
    %67 = arith.mulf %10, %66 : vector<8x32xf32>
    %c0_52 = arith.constant 0 : index
    %c0_53 = arith.constant 0 : index
    %68 = vector.load %arg9[%c0_52, %c0_53] : memref<1x32xf32, #tpu.memory_space<vmem>>, vector<1x32xf32>
    %69 = vector.broadcast %68 : vector<1x32xf32> to vector<8x32xf32>
    %70 = arith.addf %67, %69 : vector<8x32xf32>
    %cst_54 = arith.constant 0.000000e+00 : f32
    %71 = vector.broadcast %cst_54 : f32 to vector<8x32xf32>
    %72 = arith.maximumf %70, %71 : vector<8x32xf32>
    %c0_55 = arith.constant 0 : index
    %c0_56 = arith.constant 0 : index
    %73 = vector.load %arg10[%c0_55, %c0_56] : memref<32x64xf32, #tpu.memory_space<vmem>>, vector<32x64xf32>
    %cst_57 = arith.constant dense<0.000000e+00> : vector<8x64xf32>
    %74 = tpu.matmul %72, %73, %cst_57 {dimension_numbers = #tpu.dot_dimension_numbers<[1], [0], [0], [1], [0, 0, 1, 1], [], []>} : vector<8x32xf32>, vector<32x64xf32>, vector<8x64xf32> -> vector<8x64xf32>
    %75 = arith.addf %64, %74 : vector<8x64xf32>
    %c0_58 = arith.constant 0 : index
    %c0_59 = arith.constant 0 : index
    %76 = vector.load %arg11[%c0_58, %c0_59] : memref<1x64xf32, #tpu.memory_space<vmem>>, vector<1x64xf32>
    %77 = vector.broadcast %76 : vector<1x64xf32> to vector<8x64xf32>
    %78 = arith.mulf %75, %77 : vector<8x64xf32>
    %c0_60 = arith.constant 0 : index
    %c0_61 = arith.constant 0 : index
    %79 = vector.load %arg12[%c0_60, %c0_61] : memref<1x64xf32, #tpu.memory_space<vmem>>, vector<1x64xf32>
    %80 = vector.broadcast %79 : vector<1x64xf32> to vector<8x64xf32>
    %81 = arith.addf %78, %80 : vector<8x64xf32>
    %cst_62 = arith.constant 0.000000e+00 : f32
    %82 = vector.broadcast %cst_62 : f32 to vector<8x64xf32>
    %83 = arith.maximumf %81, %82 : vector<8x64xf32>
    %c0_63 = arith.constant 0 : index
    %c0_64 = arith.constant 0 : index
    %c0_65 = arith.constant 0 : index
    %84 = vector.load %arg13[%c0_63, %c0_64, %c0_65] : memref<3x64x64xf32, #tpu.memory_space<vmem>>, vector<1x64x64xf32>
    %85 = vector.shape_cast %84 : vector<1x64x64xf32> to vector<64x64xf32>
    %cst_66 = arith.constant dense<0.000000e+00> : vector<8x64xf32>
    %86 = tpu.matmul %83, %85, %cst_66 {dimension_numbers = #tpu.dot_dimension_numbers<[1], [0], [0], [1], [0, 0, 1, 1], [], []>} : vector<8x64xf32>, vector<64x64xf32>, vector<8x64xf32> -> vector<8x64xf32>
    %c1_67 = arith.constant 1 : index
    %c0_68 = arith.constant 0 : index
    %c0_69 = arith.constant 0 : index
    %87 = vector.load %arg13[%c1_67, %c0_68, %c0_69] : memref<3x64x64xf32, #tpu.memory_space<vmem>>, vector<1x64x64xf32>
    %88 = vector.shape_cast %87 : vector<1x64x64xf32> to vector<64x64xf32>
    %cst_70 = arith.constant dense<0.000000e+00> : vector<8x64xf32>
    %89 = tpu.matmul %83, %88, %cst_70 {dimension_numbers = #tpu.dot_dimension_numbers<[1], [0], [0], [1], [0, 0, 1, 1], [], []>} : vector<8x64xf32>, vector<64x64xf32>, vector<8x64xf32> -> vector<8x64xf32>
    %c2_71 = arith.constant 2 : index
    %c0_72 = arith.constant 0 : index
    %c0_73 = arith.constant 0 : index
    %90 = vector.load %arg13[%c2_71, %c0_72, %c0_73] : memref<3x64x64xf32, #tpu.memory_space<vmem>>, vector<1x64x64xf32>
    %91 = vector.shape_cast %90 : vector<1x64x64xf32> to vector<64x64xf32>
    %cst_74 = arith.constant dense<0.000000e+00> : vector<8x64xf32>
    %92 = tpu.matmul %83, %91, %cst_74 {dimension_numbers = #tpu.dot_dimension_numbers<[1], [0], [0], [1], [0, 0, 1, 1], [], []>} : vector<8x64xf32>, vector<64x64xf32>, vector<8x64xf32> -> vector<8x64xf32>
    %cst_75 = arith.constant dense<0.000000e+00> : vector<8x64xf32>
    %93 = tpu.matmul %17, %86, %cst_75 {dimension_numbers = #tpu.dot_dimension_numbers<[1], [0], [0], [1], [0, 0, 1, 1], [], []>} : vector<8x8xf32>, vector<8x64xf32>, vector<8x64xf32> -> vector<8x64xf32>
    %94 = arith.addf %93, %89 : vector<8x64xf32>
    %cst_76 = arith.constant dense<0.000000e+00> : vector<8x64xf32>
    %95 = tpu.matmul %22, %92, %cst_76 {dimension_numbers = #tpu.dot_dimension_numbers<[1], [0], [0], [1], [0, 0, 1, 1], [], []>} : vector<8x8xf32>, vector<8x64xf32>, vector<8x64xf32> -> vector<8x64xf32>
    %96 = arith.addf %94, %95 : vector<8x64xf32>
    %c0_77 = arith.constant 0 : index
    %c0_78 = arith.constant 0 : index
    %97 = vector.load %arg14[%c0_77, %c0_78] : memref<1x64xf32, #tpu.memory_space<vmem>>, vector<1x64xf32>
    %98 = vector.broadcast %97 : vector<1x64xf32> to vector<8x64xf32>
    %99 = arith.mulf %96, %98 : vector<8x64xf32>
    %c0_79 = arith.constant 0 : index
    %c0_80 = arith.constant 0 : index
    %100 = vector.load %arg15[%c0_79, %c0_80] : memref<1x64xf32, #tpu.memory_space<vmem>>, vector<1x64xf32>
    %101 = vector.broadcast %100 : vector<1x64xf32> to vector<8x64xf32>
    %102 = arith.addf %99, %101 : vector<8x64xf32>
    %cst_81 = arith.constant 0.000000e+00 : f32
    %103 = vector.broadcast %cst_81 : f32 to vector<8x64xf32>
    %104 = arith.maximumf %102, %103 : vector<8x64xf32>
    %c0_82 = arith.constant 0 : index
    %c0_83 = arith.constant 0 : index
    %c0_84 = arith.constant 0 : index
    %105 = vector.load %arg16[%c0_82, %c0_83, %c0_84] : memref<3x64x64xf32, #tpu.memory_space<vmem>>, vector<1x64x64xf32>
    %106 = vector.shape_cast %105 : vector<1x64x64xf32> to vector<64x64xf32>
    %cst_85 = arith.constant dense<0.000000e+00> : vector<8x64xf32>
    %107 = tpu.matmul %104, %106, %cst_85 {dimension_numbers = #tpu.dot_dimension_numbers<[1], [0], [0], [1], [0, 0, 1, 1], [], []>} : vector<8x64xf32>, vector<64x64xf32>, vector<8x64xf32> -> vector<8x64xf32>
    %c1_86 = arith.constant 1 : index
    %c0_87 = arith.constant 0 : index
    %c0_88 = arith.constant 0 : index
    %108 = vector.load %arg16[%c1_86, %c0_87, %c0_88] : memref<3x64x64xf32, #tpu.memory_space<vmem>>, vector<1x64x64xf32>
    %109 = vector.shape_cast %108 : vector<1x64x64xf32> to vector<64x64xf32>
    %cst_89 = arith.constant dense<0.000000e+00> : vector<8x64xf32>
    %110 = tpu.matmul %104, %109, %cst_89 {dimension_numbers = #tpu.dot_dimension_numbers<[1], [0], [0], [1], [0, 0, 1, 1], [], []>} : vector<8x64xf32>, vector<64x64xf32>, vector<8x64xf32> -> vector<8x64xf32>
    %c2_90 = arith.constant 2 : index
    %c0_91 = arith.constant 0 : index
    %c0_92 = arith.constant 0 : index
    %111 = vector.load %arg16[%c2_90, %c0_91, %c0_92] : memref<3x64x64xf32, #tpu.memory_space<vmem>>, vector<1x64x64xf32>
    %112 = vector.shape_cast %111 : vector<1x64x64xf32> to vector<64x64xf32>
    %cst_93 = arith.constant dense<0.000000e+00> : vector<8x64xf32>
    %113 = tpu.matmul %104, %112, %cst_93 {dimension_numbers = #tpu.dot_dimension_numbers<[1], [0], [0], [1], [0, 0, 1, 1], [], []>} : vector<8x64xf32>, vector<64x64xf32>, vector<8x64xf32> -> vector<8x64xf32>
    %cst_94 = arith.constant dense<0.000000e+00> : vector<8x64xf32>
    %114 = tpu.matmul %17, %107, %cst_94 {dimension_numbers = #tpu.dot_dimension_numbers<[1], [0], [0], [1], [0, 0, 1, 1], [], []>} : vector<8x8xf32>, vector<8x64xf32>, vector<8x64xf32> -> vector<8x64xf32>
    %115 = arith.addf %114, %110 : vector<8x64xf32>
    %cst_95 = arith.constant dense<0.000000e+00> : vector<8x64xf32>
    %116 = tpu.matmul %22, %113, %cst_95 {dimension_numbers = #tpu.dot_dimension_numbers<[1], [0], [0], [1], [0, 0, 1, 1], [], []>} : vector<8x8xf32>, vector<8x64xf32>, vector<8x64xf32> -> vector<8x64xf32>
    %117 = arith.addf %115, %116 : vector<8x64xf32>
    %118 = arith.addf %117, %75 : vector<8x64xf32>
    %c0_96 = arith.constant 0 : index
    %c0_97 = arith.constant 0 : index
    %c0_98 = arith.constant 0 : index
    %119 = vector.load %arg17[%c0_96, %c0_97, %c0_98] : memref<1x8x64xf32, #tpu.memory_space<vmem>>, vector<1x8x64xf32>
    %120 = vector.shape_cast %119 : vector<1x8x64xf32> to vector<8x64xf32>
    %121 = vector.shape_cast %118 : vector<8x64xf32> to vector<1x8x64xf32>
    tpu.vector_store %arg17[%c0_96, %c0_97, %c0_98], %121 {strides = array<i32>} : memref<1x8x64xf32, #tpu.memory_space<vmem>>, vector<1x8x64xf32>,
    return
  }
  func.func @transform_0(%arg0: i32) -> (i32, i32, i32, i32) {
    %c0_i32 = arith.constant 0 : i32
    %c0_i32_0 = arith.constant 0 : i32
    %c0_i32_1 = arith.constant 0 : i32
    %c0_i32_2 = arith.constant 0 : i32
    return %arg0, %c0_i32, %c0_i32_0, %c0_i32_1 : i32, i32, i32, i32
  }
  func.func @transform_1(%arg0: i32) -> (i32, i32) {
    %c0_i32 = arith.constant 0 : i32
    %c0_i32_0 = arith.constant 0 : i32
    %c0_i32_1 = arith.constant 0 : i32
    return %c0_i32, %c0_i32_0 : i32, i32
  }
  func.func @transform_2(%arg0: i32) -> (i32, i32) {
    %c0_i32 = arith.constant 0 : i32
    %c0_i32_0 = arith.constant 0 : i32
    %c0_i32_1 = arith.constant 0 : i32
    return %c0_i32, %c0_i32_0 : i32, i32
  }
  func.func @transform_3(%arg0: i32) -> (i32, i32, i32) {
    %c0_i32 = arith.constant 0 : i32
    %c0_i32_0 = arith.constant 0 : i32
    %c0_i32_1 = arith.constant 0 : i32
    %c0_i32_2 = arith.constant 0 : i32
    return %c0_i32, %c0_i32_0, %c0_i32_1 : i32, i32, i32
  }
  func.func @transform_4(%arg0: i32) -> (i32, i32) {
    %c0_i32 = arith.constant 0 : i32
    %c0_i32_0 = arith.constant 0 : i32
    %c0_i32_1 = arith.constant 0 : i32
    return %c0_i32, %c0_i32_0 : i32, i32
  }
  func.func @transform_5(%arg0: i32) -> (i32, i32) {
    %c0_i32 = arith.constant 0 : i32
    %c0_i32_0 = arith.constant 0 : i32
    %c0_i32_1 = arith.constant 0 : i32
    return %c0_i32, %c0_i32_0 : i32, i32
  }
  func.func @transform_6(%arg0: i32) -> (i32, i32, i32) {
    %c0_i32 = arith.constant 0 : i32
    %c0_i32_0 = arith.constant 0 : i32
    %c0_i32_1 = arith.constant 0 : i32
    %c0_i32_2 = arith.constant 0 : i32
    return %c0_i32, %c0_i32_0, %c0_i32_1 : i32, i32, i32
  }
  func.func @transform_7(%arg0: i32) -> (i32, i32) {
    %c0_i32 = arith.constant 0 : i32
    %c0_i32_0 = arith.constant 0 : i32
    %c0_i32_1 = arith.constant 0 : i32
    return %c0_i32, %c0_i32_0 : i32, i32
  }
  func.func @transform_8(%arg0: i32) -> (i32, i32) {
    %c0_i32 = arith.constant 0 : i32
    %c0_i32_0 = arith.constant 0 : i32
    %c0_i32_1 = arith.constant 0 : i32
    return %c0_i32, %c0_i32_0 : i32, i32
  }
  func.func @transform_9(%arg0: i32) -> (i32, i32) {
    %c0_i32 = arith.constant 0 : i32
    %c0_i32_0 = arith.constant 0 : i32
    %c0_i32_1 = arith.constant 0 : i32
    return %c0_i32, %c0_i32_0 : i32, i32
  }
  func.func @transform_10(%arg0: i32) -> (i32, i32) {
    %c0_i32 = arith.constant 0 : i32
    %c0_i32_0 = arith.constant 0 : i32
    %c0_i32_1 = arith.constant 0 : i32
    return %c0_i32, %c0_i32_0 : i32, i32
  }
  func.func @transform_11(%arg0: i32) -> (i32, i32) {
    %c0_i32 = arith.constant 0 : i32
    %c0_i32_0 = arith.constant 0 : i32
    %c0_i32_1 = arith.constant 0 : i32
    return %c0_i32, %c0_i32_0 : i32, i32
  }
  func.func @transform_12(%arg0: i32) -> (i32, i32, i32) {
    %c0_i32 = arith.constant 0 : i32
    %c0_i32_0 = arith.constant 0 : i32
    %c0_i32_1 = arith.constant 0 : i32
    %c0_i32_2 = arith.constant 0 : i32
    return %c0_i32, %c0_i32_0, %c0_i32_1 : i32, i32, i32
  }
  func.func @transform_13(%arg0: i32) -> (i32, i32) {
    %c0_i32 = arith.constant 0 : i32
    %c0_i32_0 = arith.constant 0 : i32
    %c0_i32_1 = arith.constant 0 : i32
    return %c0_i32, %c0_i32_0 : i32, i32
  }
  func.func @transform_14(%arg0: i32) -> (i32, i32) {
    %c0_i32 = arith.constant 0 : i32
    %c0_i32_0 = arith.constant 0 : i32
    %c0_i32_1 = arith.constant 0 : i32
    return %c0_i32, %c0_i32_0 : i32, i32
  }
  func.func @transform_15(%arg0: i32) -> (i32, i32, i32) {
    %c0_i32 = arith.constant 0 : i32
    %c0_i32_0 = arith.constant 0 : i32
    %c0_i32_1 = arith.constant 0 : i32
    %c0_i32_2 = arith.constant 0 : i32
    return %c0_i32, %c0_i32_0, %c0_i32_1 : i32, i32, i32
  }
  func.func @transform_16(%arg0: i32) -> (i32, i32, i32) {
    %c0_i32 = arith.constant 0 : i32
    %c0_i32_0 = arith.constant 0 : i32
    %c0_i32_1 = arith.constant 0 : i32
    return %arg0, %c0_i32, %c0_i32_0 : i32, i32, i32
  }
}

</mosaic_0001>

<bundles_post_ra>
// kernel: down_block_forward.1
= control target key start
LH: loop header
LB: loop body
LE: loop exit
PB: predicated region body
PF: predicated region fallthrough
CT: control target
= control target key end

     0   :  { %s3005_s21 = smov 0   ;;  %s3458_s0 = inlined_call_operand.vmem [shape: f32[2,4,8,32], index: 0, kind: input, shape index: {}]   ;;  %s3459_s1 = inlined_call_operand.vmem [shape: f32[1,32], index: 1, kind: input, shape index: {}]   ;;  %s3460_s2 = inlined_call_operand.vmem [shape: f32[1,32], index: 2, kind: input, shape index: {}]   ;;  %s3461_s3 = inlined_call_operand.vmem [shape: f32[3,32,64], index: 3, kind: input, shape index: {}]   ;;  %s3462_s4 = inlined_call_operand.vmem [shape: f32[1,64], index: 4, kind: input, shape index: {}]   ;;  %s3463_s5 = inlined_call_operand.vmem [shape: f32[1,64], index: 5, kind: input, shape index: {}]   ;;  %s3464_s6 = inlined_call_operand.vmem [shape: f32[3,64,64], index: 6, kind: input, shape index: {}]   ;;  %s3465_s7 = inlined_call_operand.vmem [shape: f32[1,32], index: 7, kind: input, shape index: {}]   ;;  %s3466_s8 = inlined_call_operand.vmem [shape: f32[1,32], index: 8, kind: input, shape index: {}]   ;;  %s3467_s9 = inlined_call_operand.vmem [shape: f32[32,64], index: 9, kind: input, shape index: {}]   ;;  %s3468_s10 = inlined_call_operand.vmem [shape: f32[1,64], index: 10, kind: input, shape index: {}]   ;;  %s3469_s11 = inlined_call_operand.vmem [shape: f32[1,64], index: 11, kind: input, shape index: {}]   ;;  %s3470_s12 = inlined_call_operand.vmem [shape: f32[3,64,64], index: 12, kind: input, shape index: {}]   ;;  %s3471_s13 = inlined_call_operand.vmem [shape: f32[1,64], index: 13, kind: input, shape index: {}]   ;;  %s3472_s14 = inlined_call_operand.vmem [shape: f32[1,64], index: 14, kind: input, shape index: {}]   ;;  %s3473_s15 = inlined_call_operand.vmem [shape: f32[3,64,64], index: 15, kind: input, shape index: {}]   ;;  %s3474_s16 = inlined_call_operand.vmem [shape: f32[2,8,64], index: 16, kind: output, shape index: {}]  }
   0x1   :  { %3475 = sst [smem:[#allocation2_spill]] %s3458_s0 }
   0x2 LB: > { %s2277_s22 = sadd.s32 4294967295, %s2915_s21   ;;  %p2281_p0 = scmp.ge.s32.totalorder %s2915_s21, 1  ;;  %s2915_s21 = sphi %s3005_s21, %s26_s21  }
   0x3   : > { %p462_p1 = scmp.lt.s32.totalorder %s2915_s21, 3 }
   0x5   : > { %p463_p2 = pnand %p2281_p0, %p462_p1 }
   0x6   : > { %v559_v0 = vld [vmem:[%s3461_s3] sm:$0xff] (!%p463_p2)  ;;  %v560_v1 = vld [vmem:[%s3461_s3 + $0x8] sm:$0xff] (!%p463_p2)  ;;  %v561_v2 = vld [vmem:[%s3461_s3 + $0x10] sm:$0xff] (!%p463_p2)  ;;  %v2917_v3 = vmov (!%p463_p2), 0.0|0.0   ;;  %vm2918_vm0 = vmmov (!%p463_p2), 0   ;;  %v2919_v6 = vmov (!%p463_p2), 0.0   ;;  %v530_v41 = vlaneseq (!%p463_p2) }
   0x7   : > { %466 = sbr.rel (%p463_p2) target bundleno = 1817 (0x719), region = 84  ;;  %2752 = vmatprep.subr.bf16.mxu0 (!%p463_p2), %v2917_v3  ;;  %v2753_v4 = vpack.c.bf16 (!%p463_p2), %v560_v1, %v559_v0  ;;  %v562_v5 = vld [vmem:[%s3461_s3 + $0x18] sm:$0xff] (!%p463_p2)  ;;  %2505 = vmatprep.mubr.msk.f32.mxu0 (!%p463_p2), %vm2918_vm0, %v2919_v6  ;;  %p511_p3 = scmp.lt.s32.totalorder (!%p463_p2), %s2277_s22, 1  ;;  %v2293_v8 = vld [vmem:[%s3461_s3 + $0x20] sm:$0xff] (!%p463_p2)  ;;  %v2294_v9 = vld [vmem:[%s3461_s3 + $0x28] sm:$0xff] (!%p463_p2)  ;;  %vm563_vm1 = vcmask (!%p463_p2), 261120  }
   0x8   : > { %2758 = vmatprep.subr.bf16.mxu1 (!%p463_p2), %v2917_v3  ;;  %2516 = vmatprep.mubr.msk.f32.mxu1 (!%p463_p2), %vm2918_vm0, %v2919_v6  ;;  %v2756_v7 = vpack.c.bf16 (!%p463_p2), %v562_v5, %v561_v2  ;;  %v2295_v10 = vld [vmem:[%s3461_s3 + $0x30] sm:$0xff] (!%p463_p2)  ;;  %v2296_v11 = vld [vmem:[%s3461_s3 + $0x38] sm:$0xff] (!%p463_p2)  ;;  %v2759_v12 = vpack.c.bf16 (!%p463_p2), %v2294_v9, %v2293_v8  ;;  %s3476_s29 = sld [smem:[#allocation2_spill]] (!%p463_p2)  ;;  %v2290_v20 = vld [vmem:[%s3459_s1] ss:$0 sm:$0xff] (!%p463_p2)  ;;  %v533_v42 = vand.u32 (!%p463_p2), 127, %v530_v41 }
   0x9   : > { %2754 = vmatpush3.bf16.msra.mxu0 (!%p463_p2), %v2753_v4  ;;  %v2762_v16 = vpack.c.bf16 (!%p463_p2), %v2296_v11, %v2295_v10  ;;  %v2291_v22 = vld [vmem:[%s3460_s2] ss:$0 sm:$0xff] (!%p463_p2)  ;;  %v2299_v25 = vld [vmem:[%s3461_s3 + $0x48] sm:$0xff] (!%p463_p2)  ;;  %v2300_v29 = vld [vmem:[%s3461_s3 + $0x50] sm:$0xff] (!%p463_p2)  ;;  %v531_v43 = vshrl.u32 (!%p463_p2), %v530_v41, 7  ;;  %vm787_vm3 = vcmask (!%p463_p2), 64512  }
   0xa   : > { %2755 = vmatprep.subr.bf16.mxu0 (!%p463_p2), %v2917_v3  ;;  %2760 = vmatpush3.bf16.msra.mxu1 (!%p463_p2), %v2759_v12  ;;  %v2298_v24 = vld [vmem:[%s3461_s3 + $0x40] sm:$0xff] (!%p463_p2)  ;;  %v2301_v30 = vld [vmem:[%s3461_s3 + $0x58] sm:$0xff] (!%p463_p2)  ;;  %v953_v33 = vld [vmem:[%s3464_s6 + $0x8] sm:$0xff] (!%p463_p2)  ;;  %v534_v44 = vadd.s32 (!%p463_p2), 1, %v533_v42  ;;  %vm960_vm5 = vcmask (!%p463_p2), 523264  }
   0xb   : > { %2761 = vmatprep.subr.bf16.mxu1 (!%p463_p2), %v2917_v3  ;;  %v2765_v27 = vpack.c.bf16 (!%p463_p2), %v2299_v25, %v2298_v24  ;;  %v2768_v31 = vpack.c.bf16 (!%p463_p2), %v2301_v30, %v2300_v29  ;;  %v952_v32 = vld [vmem:[%s3464_s6] sm:$0xff] (!%p463_p2)  ;;  %v954_v35 = vld [vmem:[%s3464_s6 + $0x10] sm:$0xff] (!%p463_p2)  ;;  %v955_v36 = vld [vmem:[%s3464_s6 + $0x18] sm:$0xff] (!%p463_p2)  ;;  %v538_v47 = vadd.s32 (!%p463_p2), 1, %v531_v43 }
   0xc   : > { %v2771_v34 = vpack.c.bf16 (!%p463_p2), %v953_v33, %v952_v32  ;;  %v2774_v37 = vpack.c.bf16 (!%p463_p2), %v955_v36, %v954_v35  ;;  %v956_v38 = vld [vmem:[%s3464_s6 + $0x20] sm:$0xff] (!%p463_p2)  ;;  %v957_v39 = vld [vmem:[%s3464_s6 + $0x28] sm:$0xff] (!%p463_p2)  ;;  %vm535_vm2 = vcmp.eq.s32.totalorder (!%p463_p2), %v531_v43, %v534_v44  ;;  %v2310_v54 = vld [vmem:[%s3464_s6 + $0x50] sm:$0xff] (!%p463_p2) }
   0xd   : > { %2757 = vmatpush3.bf16.msra.mxu0 (!%p463_p2), %v2756_v7  ;;  %v2777_v40 = vpack.c.bf16 (!%p463_p2), %v957_v39, %v956_v38  ;;  %v3107_v45 = vsel (!%p463_p2), %vm535_vm2, 1.0, %v2919_v6  ;;  %vm539_vm4 = vcmp.eq.s32.totalorder (!%p463_p2), %v533_v42, %v538_v47  ;;  %v2308_v49 = vld [vmem:[%s3464_s6 + $0x40] sm:$0xff] (!%p463_p2)  ;;  %v2309_v50 = vld [vmem:[%s3464_s6 + $0x48] sm:$0xff] (!%p463_p2)  ;;  %v2311_v55 = vld [vmem:[%s3464_s6 + $0x58] sm:$0xff] (!%p463_p2) }
   0xe   : > { %s3478_s22 = smov (!%p511_p3, %s2277_s22), 1  ;;  %2764 = vmatprep.subr.bf16.mxu0 %v2917_v3  ;;  %2763 = vmatpush3.bf16.msra.mxu1 %v2762_v16  ;;  %v3121_v51 = vsel %vm539_vm4, 1.0, %v2919_v6  ;;  %v2783_v52 = vpack.c.bf16 %v2309_v50, %v2308_v49  ;;  %v2786_v57 = vpack.c.bf16 %v2311_v55, %v2310_v54  ;;  %v2312_v58 = vld [vmem:[%s3464_s6 + $0x60] sm:$0xff]  ;;  %v2313_v59 = vld [vmem:[%s3464_s6 + $0x68] sm:$0xff]  ;;  %v958_v61 = vld [vmem:[%s3464_s6 + $0x30] sm:$0xff] }
   0xf   : > { %s2379_s26 = sshll.u32 %s3478_s22, 5  ;;  %2530 = vmatprep.subr.mxu1 %v2919_v6  ;;  %v2789_v60 = vpack.c.bf16 %v2313_v59, %v2312_v58  ;;  %v959_v62 = vld [vmem:[%s3464_s6 + $0x38] sm:$0xff]  ;;  %v2314_v0 = vld [vmem:[%s3464_s6 + $0x70] sm:$0xff]  ;;  %v2305_v4 = vld [vmem:[%s3462_s4] ss:$0 sm:$0xff] }
  0x10   : > { %s515_s30 = scalar_lea.vmem %s3476_s29, %s2379_s26  ;;  %v2780_v63 = vpack.c.bf16 %v959_v62, %v958_v61  ;;  %v2315_v1 = vld [vmem:[%s3464_s6 + $0x78] sm:$0xff]  ;;  %v2306_v7 = vld [vmem:[%s3463_s5] ss:$0 sm:$0xff]  ;;  %v2318_v11 = vld [vmem:[%s3464_s6 + $0x88] sm:$0xff]  ;;  %s2284_s29 = sshll.u32 %s3478_s22, 3 }
  0x11   : > { %v520_v13 = vld [vmem:[%s515_s30] sm:$0xff]  ;;  %v2285_v14 = vld [vmem:[%s515_s30 + $0x8] sm:$0xff]  ;;  %v2286_v15 = vld [vmem:[%s515_s30 + $0x10] sm:$0xff]  ;;  %v2792_v2 = vpack.c.bf16 %v2315_v1, %v2314_v0  ;;  %s519_s17 = scalar_lea.vmem %s3474_s16, %s2284_s29 }
  0x12   : > { %v523_v17 = vmax.f32 %v520_v13, %v2285_v14  ;;  %v2287_v18 = vld [vmem:[%s515_s30 + $0x18] sm:$0xff]  ;;  %v2317_v10 = vld [vmem:[%s3464_s6 + $0x80] sm:$0xff]  ;;  %v1450_v32 = vld [vmem:[%s3470_s12 + $0x28] sm:$0xff] }
  0x13   : > { %v2795_v13 = vpack.c.bf16 %v2318_v11, %v2317_v10  ;;  %v2320_v16 = vld [vmem:[%s3464_s6 + $0x98] sm:$0xff]  ;;  %v1445_v25 = vld [vmem:[%s3470_s12] sm:$0xff]  ;;  %v1351_v38 = vld [vmem:[%s3467_s9 + $0x8] sm:$0xff] }
  0x14   : > { %v526_v19 = vmax.f32 %v523_v17, %v2286_v15  ;;  %v2319_v15 = vld [vmem:[%s3464_s6 + $0x90] sm:$0xff]  ;;  %v1448_v29 = vld [vmem:[%s3470_s12 + $0x18] sm:$0xff]  ;;  %v2328_v36 = vld [vmem:[%s3465_s7] ss:$0 sm:$0xff] }
  0x15   : > { %v2798_v17 = vpack.c.bf16 %v2320_v16, %v2319_v15  ;;  %v2329_v41 = vld [vmem:[%s3466_s8] ss:$0 sm:$0xff]  ;;  %v1352_v43 = vld [vmem:[%s3467_s9 + $0x10] sm:$0xff]  ;;  %v1353_v44 = vld [vmem:[%s3467_s9 + $0x18] sm:$0xff] }
  0x16   : > { %v3055_v21 = vmax.f32 %v526_v19, %v2287_v18  ;;  %v2321_v18 = vld [vmem:[%s3464_s6 + $0xa0] sm:$0xff]  ;;  %v2322_v19 = vld [vmem:[%s3464_s6 + $0xa8] sm:$0xff]  ;;  %v2810_v47 = vpack.c.bf16 %v1353_v44, %v1352_v43  ;;  %v2337_v54 = vld [vmem:[%s3470_s12 + $0x58] sm:$0xff] }
  0x17   : > { %v2335_v49 = vld [vmem:[%s3470_s12 + $0x48] sm:$0xff]  ;;  %v1451_v59 = vld [vmem:[%s3470_s12 + $0x30] sm:$0xff]  ;;  %v2331_v1 = vld [vmem:[%s3468_s10] ss:$0 sm:$0xff] }
  0x18   : > { %v549_v23 = vmul.f32 %v2290_v20, %v3055_v21  ;;  %v2801_v20 = vpack.c.bf16 %v2322_v19, %v2321_v18  ;;  %v1340_v39 = vmul.f32 %v2328_v36, %v3055_v21  ;;  %v2340_v62 = vld [vmem:[%s3470_s12 + $0x70] sm:$0xff]  ;;  %v2347_v16 = vld [vmem:[%s3470_s12 + $0xa0] sm:$0xff]  ;;  %v1845_v36 = vld [vmem:[%s3473_s15 + $0x18] sm:$0xff] }
  0x19   : > { %v2349_v19 = vld [vmem:[%s3470_s12 + $0xb0] sm:$0xff]  ;;  %v2362_v43 = vld [vmem:[%s3473_s15 + $0x68] sm:$0xff] }
  0x1a   : > { %v557_v26 = vadd.f32 %v2291_v22, %v549_v23  ;;  %v2323_v22 = vld [vmem:[%s3464_s6 + $0xb0] sm:$0xff]  ;;  %v2324_v23 = vld [vmem:[%s3464_s6 + $0xb8] sm:$0xff]  ;;  %v1348_v21 = vadd.f32 %v2329_v41, %v1340_v39  ;;  %v1846_v39 = vld [vmem:[%s3473_s15 + $0x20] sm:$0xff] }
  0x1b   : > { %v2804_v24 = vpack.c.bf16 %v2324_v23, %v2323_v22  ;;  %v2357_v23 = vld [vmem:[%s3473_s15 + $0x40] sm:$0xff] }
  0x1c   : > { %v558_v28 = vmax.f32 %v557_v26, 0.0  ;;  %v1446_v26 = vld [vmem:[%s3470_s12 + $0x8] sm:$0xff]  ;;  %v1349_v50 = vmax.f32 %v1348_v21, 0.0  ;;  %v1849_v21 = vld [vmem:[%s3473_s15 + $0x38] sm:$0xff] }
  0x1e   : > { %2506 = vmatmul.mubr.msk.f32.vlgmr.msra.gmra.mrb[0].mxu0 %vm563_vm1, %v558_v28  ;;  %2517 = vmatmul.mubr.msk.f32.vlgmr.msra.gmra.mrb[0].mxu1 %vm563_vm1, %v558_v28 }
  0x1f   : > { %2766 = vmatpush3.bf16.msra.mxu0 %v2765_v27  ;;  %2527 = vmatprep.mubr.msk.f32.mxu0 %vm2918_vm0, %v2919_v6  ;;  %v2813_v27 = vpack.c.bf16 %v1446_v26, %v1445_v25  ;;  %v2359_v26 = vld [vmem:[%s3473_s15 + $0x50] sm:$0xff] }
  0x20   : > { %2767 = vmatprep.subr.bf16.mxu0 %v2917_v3  ;;  %2532 = vmatprep.mubr.msk.f32.mxu1 %vm2918_vm0, %v2919_v6 }
  0x23   : > { %2769 = vmatpush3.bf16.msra.mxu0 %v2768_v31  ;;  %v1449_v31 = vld [vmem:[%s3470_s12 + $0x20] sm:$0xff] }
  0x24   : > { %2770 = vmatprep.subr.bf16.mxu0 %v2917_v3  ;;  %v2819_v33 = vpack.c.bf16 %v1450_v32, %v1449_v31  ;;  %v1842_v31 = vld [vmem:[%s3473_s15] sm:$0xff]  ;;  %v1843_v32 = vld [vmem:[%s3473_s15 + $0x8] sm:$0xff] }
  0x26   : > { %2528 = vmatmul.mubr.msk.f32.vlgmr.msra.gmra.mrb[2].mxu0 %vm563_vm1, %v558_v28  ;;  %v1447_v28 = vld [vmem:[%s3470_s12 + $0x10] sm:$0xff] }
  0x27   : > { %2556 = vmatprep.mubr.msk.f32.mxu0 %vm2918_vm0, %v2919_v6  ;;  %2772 = vmatpush3.bf16.msra.mxu0 %v2771_v34  ;;  %v2816_v30 = vpack.c.bf16 %v1448_v29, %v1447_v28 }
  0x28   : > { %2773 = vmatprep.subr.bf16.mxu0 %v2917_v3 }
  0x2b   : > { %2775 = vmatpush3.bf16.msra.mxu0 %v2774_v37  ;;  %v1350_v37 = vld [vmem:[%s3467_s9] sm:$0xff] }
  0x2c   : > { %2776 = vmatprep.subr.bf16.mxu0 %v2917_v3 }
  0x2f   : > { %2778 = vmatpush3.bf16.msra.mxu0 %v2777_v40  ;;  %v2807_v40 = vpack.c.bf16 %v1351_v38, %v1350_v37 }
  0x30   : > { %2779 = vmatprep.subr.bf16.mxu0 %v2917_v3 }
  0x33   : > { %2781 = vmatpush3.bf16.msra.mxu0 %v2780_v63  ;;  %v2341_v63 = vld [vmem:[%s3470_s12 + $0x78] sm:$0xff] }
  0x34   : > { %2794 = vmatprep.subr.bf16.mxu0 %v2917_v3  ;;  %v2834_v0 = vpack.c.bf16 %v2341_v63, %v2340_v62  ;;  %v2368_v62 = vld [vmem:[%s3473_s15 + $0x90] sm:$0xff]  ;;  %v2369_v63 = vld [vmem:[%s3473_s15 + $0x98] sm:$0xff] }
  0xf1   : > { %v633_v46 = vpop.f32.mrb[0].mxu0 }
  0xf2   : > { %v2507_v48 = vpop.f32.mrb[1].mxu0  ;;  %2531 = vmatpush3.msra.mxu1 %v633_v46 }
  0xf3   : > { %2533 = vmatmul.mubr.msk.f32.vlgmr.msra.gmra.mrb[0].mxu1 %vm787_vm3, %v3107_v45  ;;  %2535 = vmatprep.subr.mxu1 %v2919_v6  ;;  %v2334_v48 = vld [vmem:[%s3470_s12 + $0x40] sm:$0xff] }
  0xf4   : > { %2537 = vmatprep.mubr.msk.f32.mxu1 %vm2918_vm0, %v2919_v6 }
  0xf9   : > { %v783_v53 = vpop.f32.mrb[2].mxu0 }
  0xfa   : > { %v2529_v56 = vpop.f32.mrb[3].mxu0  ;;  %2536 = vmatpush3.msra.mxu1 %v783_v53  ;;  %v2336_v53 = vld [vmem:[%s3470_s12 + $0x50] sm:$0xff] }
  0xfb   : > { %2538 = vmatmul.mubr.msk.f32.vlgmr.msra.gmra.mrb[0].mxu1 %vm787_vm3, %v3121_v51  ;;  %2782 = vmatprep.subr.bf16.mxu1 %v2917_v3  ;;  %v2828_v55 = vpack.c.bf16 %v2337_v54, %v2336_v53  ;;  %v2338_v56 = vld [vmem:[%s3470_s12 + $0x60] sm:$0xff] }
  0xfc   : > { %2784 = vmatpush3.bf16.msra.mxu1 %v2783_v52  ;;  %2575 = vmatprep.mubr.msk.f32.mxu1 %vm2918_vm0, %v2919_v6  ;;  %v2825_v52 = vpack.c.bf16 %v2335_v49, %v2334_v48  ;;  %v2363_v48 = vld [vmem:[%s3473_s15 + $0x70] sm:$0xff]  ;;  %v2364_v49 = vld [vmem:[%s3473_s15 + $0x78] sm:$0xff]  ;;  %v2355_v54 = vld [vmem:[%s3472_s14] ss:$0 sm:$0xff] }
  0xfd   : > { %2785 = vmatprep.subr.bf16.mxu1 %v2917_v3 }
 0x100   : > { %2787 = vmatpush3.bf16.msra.mxu1 %v2786_v57  ;;  %v2339_v57 = vld [vmem:[%s3470_s12 + $0x68] sm:$0xff] }
 0x101   : > { %2788 = vmatprep.subr.bf16.mxu1 %v2917_v3  ;;  %v2831_v58 = vpack.c.bf16 %v2339_v57, %v2338_v56  ;;  %v2366_v57 = vld [vmem:[%s3473_s15 + $0x80] sm:$0xff] }
 0x104   : > { %2790 = vmatpush3.bf16.msra.mxu1 %v2789_v60  ;;  %v1452_v60 = vld [vmem:[%s3470_s12 + $0x38] sm:$0xff] }
 0x105   : > { %2791 = vmatprep.subr.bf16.mxu1 %v2917_v3  ;;  %v2822_v61 = vpack.c.bf16 %v1452_v60, %v1451_v59 }
 0x108   : > { %2793 = vmatpush3.bf16.msra.mxu1 %v2792_v2 }
 0x109   : > { %2597 = vmatprep.subr.mxu1 %v2919_v6 }
 0x1ce   : > { %v930_v5 = vpop.f32.mrb[0].mxu1 }
 0x1cf   : > { %v942_v8 = vmul.f32 %v2305_v4, %v930_v5  ;;  %v2539_v9 = vpop.f32.mrb[1].mxu1  ;;  %v2332_v4 = vld [vmem:[%s3469_s11] ss:$0 sm:$0xff] }
 0x1d0   : > { %v2344_v9 = vld [vmem:[%s3470_s12 + $0x88] sm:$0xff] }
 0x1d1   : > { %v950_v12 = vadd.f32 %v2306_v7, %v942_v8  ;;  %v2343_v8 = vld [vmem:[%s3470_s12 + $0x80] sm:$0xff] }
 0x1d2   : > { %v2837_v11 = vpack.c.bf16 %v2344_v9, %v2343_v8  ;;  %v2373_v8 = vld [vmem:[%s3473_s15 + $0xb8] sm:$0xff] }
 0x1d3   : > { %v951_v14 = vmax.f32 %v950_v12, 0.0 }
 0x1d5   : > { %2557 = vmatmul.mubr.msk.f32.vlgmr.msra.gmra.mrb[4].mxu0 %vm960_vm5, %v951_v14  ;;  %2576 = vmatmul.mubr.msk.f32.vlgmr.msra.gmra.mrb[2].mxu1 %vm960_vm5, %v951_v14 }
 0x1d6   : > { %2796 = vmatpush3.bf16.msra.mxu0 %v2795_v13  ;;  %2594 = vmatprep.mubr.msk.f32.mxu0 %vm2918_vm0, %v2919_v6  ;;  %v2345_v13 = vld [vmem:[%s3470_s12 + $0x90] sm:$0xff] }
 0x1d7   : > { %2797 = vmatprep.subr.bf16.mxu0 %v2917_v3  ;;  %2599 = vmatprep.mubr.msk.f32.mxu1 %vm2918_vm0, %v2919_v6 }
 0x1da   : > { %2799 = vmatpush3.bf16.msra.mxu0 %v2798_v17  ;;  %v2348_v17 = vld [vmem:[%s3470_s12 + $0xa8] sm:$0xff] }
 0x1db   : > { %2800 = vmatprep.subr.bf16.mxu0 %v2917_v3  ;;  %v2843_v18 = vpack.c.bf16 %v2348_v17, %v2347_v16 }
 0x1de   : > { %2802 = vmatpush3.bf16.msra.mxu0 %v2801_v20  ;;  %v2350_v20 = vld [vmem:[%s3470_s12 + $0xb8] sm:$0xff] }
 0x1df   : > { %2803 = vmatprep.subr.bf16.mxu0 %v2917_v3  ;;  %v2846_v22 = vpack.c.bf16 %v2350_v20, %v2349_v19 }
 0x1e2   : > { %2805 = vmatpush3.bf16.msra.mxu0 %v2804_v24  ;;  %v2358_v24 = vld [vmem:[%s3473_s15 + $0x48] sm:$0xff] }
 0x1e3   : > { %2812 = vmatprep.subr.bf16.mxu0 %v2917_v3  ;;  %v2861_v25 = vpack.c.bf16 %v2358_v24, %v2357_v23 }
 0x1e5   : > { %2595 = vmatmul.mubr.msk.f32.vlgmr.msra.gmra.mrb[6].mxu0 %vm960_vm5, %v951_v14  ;;  %v2346_v14 = vld [vmem:[%s3470_s12 + $0x98] sm:$0xff] }
 0x1e6   : > { %2634 = vmatprep.mubr.msk.f32.mxu0 %vm2918_vm0, %v2919_v6  ;;  %2814 = vmatpush3.bf16.msra.mxu0 %v2813_v27  ;;  %v2840_v15 = vpack.c.bf16 %v2346_v14, %v2345_v13  ;;  %v2360_v27 = vld [vmem:[%s3473_s15 + $0x58] sm:$0xff] }
 0x1e7   : > { %2815 = vmatprep.subr.bf16.mxu0 %v2917_v3  ;;  %v2864_v28 = vpack.c.bf16 %v2360_v27, %v2359_v26 }
 0x1ea   : > { %2817 = vmatpush3.bf16.msra.mxu0 %v2816_v30 }
 0x1eb   : > { %2818 = vmatprep.subr.bf16.mxu0 %v2917_v3 }
 0x1ee   : > { %2820 = vmatpush3.bf16.msra.mxu0 %v2819_v33  ;;  %v2849_v33 = vpack.c.bf16 %v1843_v32, %v1842_v31 }
 0x1ef   : > { %2821 = vmatprep.subr.bf16.mxu0 %v2917_v3 }
 0x1f2   : > { %2823 = vmatpush3.bf16.msra.mxu0 %v2822_v61 }
 0x1f3   : > { %2836 = vmatprep.subr.bf16.mxu0 %v2917_v3 }
 0x2a8   : > { %v1030_v34 = vpop.f32.mrb[4].mxu0 }
 0x2a9   : > { %v2558_v35 = vpop.f32.mrb[5].mxu0  ;;  %2598 = vmatpush3.msra.mxu1 %v1030_v34 }
 0x2aa   : > { %2600 = vmatmul.mubr.msk.f32.vlgmr.msra.gmra.mrb[2].mxu1 %vm787_vm3, %v3107_v45  ;;  %2602 = vmatprep.subr.mxu1 %v2919_v6  ;;  %v1844_v35 = vld [vmem:[%s3473_s15 + $0x10] sm:$0xff] }
 0x2ab   : > { %2604 = vmatprep.mubr.msk.f32.mxu1 %vm2918_vm0, %v2919_v6  ;;  %v2852_v38 = vpack.c.bf16 %v1845_v36, %v1844_v35 }
 0x2b8   : > { %v1188_v42 = vpop.f32.mrb[6].mxu0 }
 0x2b9   : > { %v2596_v46 = vpop.f32.mrb[7].mxu0  ;;  %2603 = vmatpush3.msra.mxu1 %v1188_v42  ;;  %v2361_v42 = vld [vmem:[%s3473_s15 + $0x60] sm:$0xff] }
 0x2ba   : > { %2605 = vmatmul.mubr.msk.f32.vlgmr.msra.gmra.mrb[2].mxu1 %vm787_vm3, %v3121_v51  ;;  %2806 = vmatprep.subr.bf16.mxu1 %v2917_v3  ;;  %v2867_v44 = vpack.c.bf16 %v2362_v43, %v2361_v42  ;;  %v1848_v46 = vld [vmem:[%s3473_s15 + $0x30] sm:$0xff] }
 0x2bb   : > { %2808 = vmatpush3.bf16.msra.mxu1 %v2807_v40  ;;  %2615 = vmatprep.mubr.msk.f32.mxu1 %vm2918_vm0, %v2919_v6  ;;  %v1847_v40 = vld [vmem:[%s3473_s15 + $0x28] sm:$0xff] }
 0x2bc   : > { %2809 = vmatprep.subr.bf16.mxu1 %v2917_v3  ;;  %v2855_v41 = vpack.c.bf16 %v1847_v40, %v1846_v39 }
 0x2bf   : > { %2811 = vmatpush3.bf16.msra.mxu1 %v2810_v47  ;;  %v2858_v47 = vpack.c.bf16 %v1849_v21, %v1848_v46 }
 0x2c0   : > { %2824 = vmatprep.subr.bf16.mxu1 %v2917_v3 }
 0x2c2   : > { %2616 = vmatmul.mubr.msk.f32.vlgmr.msra.gmra.mrb[2].mxu1 %vm563_vm1, %v1349_v50  ;;  %v2870_v50 = vpack.c.bf16 %v2364_v49, %v2363_v48 }
 0x2c3   : > { %2826 = vmatpush3.bf16.msra.mxu1 %v2825_v52  ;;  %2653 = vmatprep.mubr.msk.f32.mxu1 %vm2918_vm0, %v2919_v6  ;;  %v2354_v52 = vld [vmem:[%s3471_s13] ss:$0 sm:$0xff] }
 0x2c4   : > { %2827 = vmatprep.subr.bf16.mxu1 %v2917_v3 }
 0x2c7   : > { %2829 = vmatpush3.bf16.msra.mxu1 %v2828_v55 }
 0x2c8   : > { %2830 = vmatprep.subr.bf16.mxu1 %v2917_v3 }
 0x2cb   : > { %2832 = vmatpush3.bf16.msra.mxu1 %v2831_v58  ;;  %v2367_v58 = vld [vmem:[%s3473_s15 + $0x88] sm:$0xff] }
 0x2cc   : > { %2833 = vmatprep.subr.bf16.mxu1 %v2917_v3  ;;  %v2873_v60 = vpack.c.bf16 %v2367_v58, %v2366_v57 }
 0x2cf   : > { %2835 = vmatpush3.bf16.msra.mxu1 %v2834_v0  ;;  %v2876_v0 = vpack.c.bf16 %v2369_v63, %v2368_v62 }
 0x2d0   : > { %2675 = vmatprep.subr.mxu1 %v2919_v6 }
 0x395   : > { %v3293_v2 = vpop.f32.mrb[2].mxu1 }
 0x396   : > { %v1435_v5 = vmul.f32 %v2331_v1, %v3293_v2  ;;  %v2617_v7 = vpop.f32.mrb[3].mxu1  ;;  %v2370_v1 = vld [vmem:[%s3473_s15 + $0xa0] sm:$0xff] }
 0x397   : > { %v2372_v7 = vld [vmem:[%s3473_s15 + $0xb0] sm:$0xff] }
 0x398   : > { %v1443_v10 = vadd.f32 %v2332_v4, %v1435_v5  ;;  %v2371_v4 = vld [vmem:[%s3473_s15 + $0xa8] sm:$0xff]  ;;  %v2882_v9 = vpack.c.bf16 %v2373_v8, %v2372_v7 }
 0x399   : > { %v2879_v5 = vpack.c.bf16 %v2371_v4, %v2370_v1 }
 0x39a   : > { %v1444_v12 = vmax.f32 %v1443_v10, 0.0 }
 0x39c   : > { %2635 = vmatmul.mubr.msk.f32.vlgmr.msra.gmra.mrb[8].mxu0 %vm960_vm5, %v1444_v12  ;;  %2654 = vmatmul.mubr.msk.f32.vlgmr.msra.gmra.mrb[4].mxu1 %vm960_vm5, %v1444_v12 }
 0x39d   : > { %2838 = vmatpush3.bf16.msra.mxu0 %v2837_v11  ;;  %2672 = vmatprep.mubr.msk.f32.mxu0 %vm2918_vm0, %v2919_v6 }
 0x39e   : > { %2839 = vmatprep.subr.bf16.mxu0 %v2917_v3  ;;  %2677 = vmatprep.mubr.msk.f32.mxu1 %vm2918_vm0, %v2919_v6 }
 0x3a1   : > { %2841 = vmatpush3.bf16.msra.mxu0 %v2840_v15 }
 0x3a2   : > { %2842 = vmatprep.subr.bf16.mxu0 %v2917_v3 }
 0x3a5   : > { %2844 = vmatpush3.bf16.msra.mxu0 %v2843_v18 }
 0x3a6   : > { %2845 = vmatprep.subr.bf16.mxu0 %v2917_v3 }
 0x3a9   : > { %2847 = vmatpush3.bf16.msra.mxu0 %v2846_v22 }
 0x3aa   : > { %2860 = vmatprep.subr.bf16.mxu0 %v2917_v3 }
 0x3ac   : > { %2673 = vmatmul.mubr.msk.f32.vlgmr.msra.gmra.mrb[10].mxu0 %vm960_vm5, %v1444_v12 }
 0x3ad   : > { %2720 = vmatprep.mubr.msk.f32.mxu0 %vm2918_vm0, %v2919_v6  ;;  %2862 = vmatpush3.bf16.msra.mxu0 %v2861_v25 }
 0x3ae   : > { %2863 = vmatprep.subr.bf16.mxu0 %v2917_v3 }
 0x3b1   : > { %2865 = vmatpush3.bf16.msra.mxu0 %v2864_v28 }
 0x3b2   : > { %2866 = vmatprep.subr.bf16.mxu0 %v2917_v3 }
 0x3b5   : > { %2868 = vmatpush3.bf16.msra.mxu0 %v2867_v44 }
 0x3b6   : > { %2869 = vmatprep.subr.bf16.mxu0 %v2917_v3 }
 0x3b9   : > { %2871 = vmatpush3.bf16.msra.mxu0 %v2870_v50 }
 0x3ba   : > { %2742 = vmatprep.subr.mxu0 %v2919_v6 }
 0x46f   : > { %v1522_v29 = vpop.f32.mrb[8].mxu0 }
 0x470   : > { %v2636_v30 = vpop.f32.mrb[9].mxu0  ;;  %2676 = vmatpush3.msra.mxu1 %v1522_v29 }
 0x471   : > { %2678 = vmatmul.mubr.msk.f32.vlgmr.msra.gmra.mrb[4].mxu1 %vm787_vm3, %v3107_v45  ;;  %2680 = vmatprep.subr.mxu1 %v2919_v6 }
 0x472   : > { %2682 = vmatprep.mubr.msk.f32.mxu1 %vm2918_vm0, %v2919_v6 }
 0x47f   : > { %v1680_v34 = vpop.f32.mrb[10].mxu0 }
 0x480   : > { %v2674_v37 = vpop.f32.mrb[11].mxu0  ;;  %2681 = vmatpush3.msra.mxu1 %v1680_v34 }
 0x481   : > { %2683 = vmatmul.mubr.msk.f32.vlgmr.msra.gmra.mrb[4].mxu1 %vm787_vm3, %v3121_v51  ;;  %2848 = vmatprep.subr.bf16.mxu1 %v2917_v3 }
 0x482   : > { %2850 = vmatpush3.bf16.msra.mxu1 %v2849_v33  ;;  %2701 = vmatprep.mubr.msk.f32.mxu1 %vm2918_vm0, %v2919_v6 }
 0x483   : > { %2851 = vmatprep.subr.bf16.mxu1 %v2917_v3 }
 0x486   : > { %2853 = vmatpush3.bf16.msra.mxu1 %v2852_v38 }
 0x487   : > { %2854 = vmatprep.subr.bf16.mxu1 %v2917_v3 }
 0x48a   : > { %2856 = vmatpush3.bf16.msra.mxu1 %v2855_v41 }
 0x48b   : > { %2857 = vmatprep.subr.bf16.mxu1 %v2917_v3 }
 0x48e   : > { %2859 = vmatpush3.bf16.msra.mxu1 %v2858_v47 }
 0x48f   : > { %2872 = vmatprep.subr.bf16.mxu1 %v2917_v3 }
 0x554   : > { %v1820_v53 = vpop.f32.mrb[4].mxu1 }
 0x555   : > { %v1832_v55 = vmul.f32 %v2354_v52, %v1820_v53  ;;  %v2684_v56 = vpop.f32.mrb[5].mxu1 }
 0x557   : > { %v1840_v59 = vadd.f32 %v2355_v54, %v1832_v55 }
 0x559   : > { %v1841_v61 = vmax.f32 %v1840_v59, 0.0 }
 0x55b   : > { %2702 = vmatmul.mubr.msk.f32.vlgmr.msra.gmra.mrb[6].mxu1 %vm960_vm5, %v1841_v61  ;;  %2721 = vmatmul.mubr.msk.f32.vlgmr.msra.gmra.mrb[12].mxu0 %vm960_vm5, %v1841_v61 }
 0x55c   : > { %2874 = vmatpush3.bf16.msra.mxu1 %v2873_v60  ;;  %2739 = vmatprep.mubr.msk.f32.mxu1 %vm2918_vm0, %v2919_v6 }
 0x55d   : > { %2875 = vmatprep.subr.bf16.mxu1 %v2917_v3  ;;  %2744 = vmatprep.mubr.msk.f32.mxu0 %vm2918_vm0, %v2919_v6 }
 0x560   : > { %2877 = vmatpush3.bf16.msra.mxu1 %v2876_v0 }
 0x561   : > { %2878 = vmatprep.subr.bf16.mxu1 %v2917_v3 }
 0x564   : > { %2880 = vmatpush3.bf16.msra.mxu1 %v2879_v5 }
 0x565   : > { %2881 = vmatprep.subr.bf16.mxu1 %v2917_v3 }
 0x568   : > { %2883 = vmatpush3.bf16.msra.mxu1 %v2882_v9 }
 0x56b   : > { %2740 = vmatmul.mubr.msk.f32.vlgmr.msra.gmra.mrb[8].mxu1 %vm960_vm5, %v1841_v61 }
 0x62e   : > { %v1919_v10 = vpop.f32.mrb[6].mxu1  ;;  %v1998_v11 = vpop.f32.mrb[12].mxu0 }
 0x62f   : > { %v2703_v12 = vpop.f32.mrb[7].mxu1  ;;  %v2722_v13 = vpop.f32.mrb[13].mxu0  ;;  %2743 = vmatpush3.msra.mxu0 %v1919_v10 }
 0x630   : > { %2745 = vmatmul.mubr.msk.f32.vlgmr.msra.gmra.mrb[14].mxu0 %vm787_vm3, %v3107_v45  ;;  %2747 = vmatprep.subr.mxu0 %v2919_v6 }
 0x631   : > { %2749 = vmatprep.mubr.msk.f32.mxu0 %vm2918_vm0, %v2919_v6 }
 0x63e   : > { %v2077_v14 = vpop.f32.mrb[8].mxu1 }
 0x63f   : > { %v2741_v15 = vpop.f32.mrb[9].mxu1  ;;  %2748 = vmatpush3.msra.mxu0 %v2077_v14 }
 0x640   : > { %2750 = vmatmul.mubr.msk.f32.vlgmr.msra.gmra.mrb[16].mxu0 %vm787_vm3, %v3121_v51 }
 0x703   : > { %v2147_v3 = vpop.f32.mrb[14].mxu0 }
 0x704   : > { %v2148_v16 = vadd.f32 %v2147_v3, %v1998_v11  ;;  %v2746_v17 = vpop.f32.mrb[15].mxu0 }
 0x713   : > { %v2217_v18 = vpop.f32.mrb[16].mxu0 }
 0x714   : > { %v2221_v19 = vadd.f32 %v2217_v18, %v2148_v16  ;;  %v2751_v20 = vpop.f32.mrb[17].mxu0 }
 0x716   : > { %v2222_v45 = vadd.f32 %v2221_v19, %v3293_v2 }
 0x718   : > { %2223 = vst.msk [vmem:[%s519_s17] sm:$0xff] %vm960_vm5, %v2222_v45 }
 0x719 PF: > { %s26_s21 = sadd.s32 1, %s2915_s21  }
 0x71a   : > { %p23_p4 = scmp.ge.s32.totalorder %s26_s21, 4  }
 0x71c   :  { %25 = sbr.rel (!%p23_p4) target bundleno = 2 (0x2), region = 125 }

</bundles_post_ra>
